<compile_context>
chip_gen: v5e
topology: v5e:2x2
jax: 0.10.0
libtpu: 0.0.40
codegen_flags: <defaults>
</compile_context>

<pallas_src>
import jax
import jax.numpy as jnp
from jax.experimental import pallas as pl
from jax.experimental.pallas import tpu as pltpu

IN_F = 784
H1 = 256
H2 = 128
OUT = 10
OUT_PAD = 128   # 10 padded up to 128 lanes (lane-dense output block)
TB_MAX = 1024   # batch tile upper bound (~10 MiB VMEM incl. double buffering)


def mlp_kernel(x_ref, w1_ref, b1_ref, w2_ref, b2_ref, w3_ref, b3_ref, o_ref):
    # x tile: (TB, 784) f32; cast to bf16 in-kernel for the MXU.
    x = x_ref[...].astype(jnp.bfloat16)

    # fc1 + relu  (MXU bf16 matmul, f32 accumulate; epilogue in f32)
    h1 = jnp.dot(x, w1_ref[...], preferred_element_type=jnp.float32)
    h1 = jnp.maximum(h1 + b1_ref[...], 0.0).astype(jnp.bfloat16)

    # fc2 + relu
    h2 = jnp.dot(h1, w2_ref[...], preferred_element_type=jnp.float32)
    h2 = jnp.maximum(h2 + b2_ref[...], 0.0).astype(jnp.bfloat16)

    # fc3 (no activation), padded to 128 output lanes, bf16 writeback
    h3 = jnp.dot(h2, w3_ref[...], preferred_element_type=jnp.float32)
    o_ref[...] = (h3 + b3_ref[...]).astype(o_ref.dtype)


def _pick_tile(batch):
    """Batch tile: multiple of 8, >= 2 tiles when possible (v7x megacore)."""
    if batch <= 8:
        return batch                      # one full-dim tile
    tb = ((batch + 1) // 2 + 7) // 8 * 8  # aim for two tiles
    return min(tb, TB_MAX)


@jax.jit
def net_forward(x, params):
    """x: (B, 1, 28, 28) or (B, 784). Returns (B, 10) f32 logits."""
    w1, b1, w2, b2, w3, b3 = params
    B = x.shape[0]
    x2d = x.reshape(B, IN_F)   # x.view(-1, 784) equivalent; no pad, no copy

    # --- tiny wrapper-side weight layout plumbing (weights only, < 1 MiB) ---
    w1b = w1.astype(jnp.bfloat16)
    w2b = w2.astype(jnp.bfloat16)
    w3b = jnp.zeros((H2, OUT_PAD), jnp.bfloat16).at[:, :OUT].set(w3.astype(jnp.bfloat16))
    b1f = b1.astype(jnp.float32).reshape(1, H1)
    b2f = b2.astype(jnp.float32).reshape(1, H2)
    b3f = jnp.zeros((1, OUT_PAD), jnp.float32).at[:, :OUT].set(
        b3.astype(jnp.float32).reshape(1, OUT))

    TB = _pick_tile(B)
    n_tiles = pl.cdiv(B, TB)

    flops = 2 * B * (IN_F * H1 + H1 * H2 + H2 * OUT_PAD)
    bytes_accessed = (x2d.size * x2d.dtype.itemsize
                      + (w1b.size + w2b.size + w3b.size) * 2
                      + (b1f.size + b2f.size + b3f.size) * 4
                      + B * OUT_PAD * 2)

    # Constant index_map => block stays VMEM-resident across the batch grid.
    resident = lambda shape: pl.BlockSpec(shape, lambda i: tuple(0 for _ in shape))

    out_padded = pl.pallas_call(
        mlp_kernel,
        out_shape=jax.ShapeDtypeStruct((B, OUT_PAD), jnp.bfloat16),
        grid=(n_tiles,),
        in_specs=[
            pl.BlockSpec((TB, IN_F), lambda i: (i, 0)),     # x: tiled over batch
            resident((IN_F, H1)), resident((1, H1)),        # fc1 (VMEM-resident)
            resident((H1, H2)), resident((1, H2)),          # fc2
            resident((H2, OUT_PAD)), resident((1, OUT_PAD)),  # fc3
        ],
        out_specs=pl.BlockSpec((TB, OUT_PAD), lambda i: (i, 0)),
        compiler_params=pltpu.CompilerParams(
            dimension_semantics=("parallel",)),
        cost_estimate=pl.CostEstimate(
            flops=flops, transcendentals=0, bytes_accessed=bytes_accessed),
    )(x2d, w1b, b1f, w2b, b2f, w3b, b3f)

    return out_padded[:, :OUT].astype(jnp.float32)


def init_params(key):
    """Deterministic init matching PyTorch nn.Linear shapes.
    Weights stored as (in, out) = transpose of PyTorch's (out, in)."""
    dims = [(784, 256), (256, 128), (128, 10)]
    params = []
    for i, (fan_in, fan_out) in enumerate(dims):
        kw, kb = jax.random.split(jax.random.fold_in(key, i))
        bound = 1.0 / jnp.sqrt(float(fan_in))
        w = jax.random.uniform(kw, (fan_in, fan_out), jnp.float32, -bound, bound)
        b = jax.random.uniform(kb, (1, fan_out), jnp.float32, -bound, bound)
        params += [w, b]
    return tuple(params)


def reference_forward(x, params):
    """Pure-JAX reference mirroring the kernel's bf16 rounding of inputs,
    weights, inter-layer activations and the bf16 logit writeback
    (accumulation stays f32)."""
    w1, b1, w2, b2, w3, b3 = params
    bf = lambda a: a.astype(jnp.bfloat16).astype(jnp.float32)
    h = bf(x.reshape(x.shape[0], -1))
    h = jnp.maximum(h @ bf(w1) + b1, 0.0)
    h = jnp.maximum(bf(h) @ bf(w2) + b2, 0.0)
    out = bf(h) @ bf(w3) + b3
    return bf(out)


if __name__ == "__main__":
    key = jax.random.PRNGKey(0)
    kx, kp = jax.random.split(key)
    params = init_params(kp)

    # B=8: single full-dim tile.  B=20: two tiles with a masked partial edge
    # block (exercises the unpadded-batch path).
    for B in (8, 20):
        x = jax.random.normal(jax.random.fold_in(kx, B), (B, 1, 28, 28), jnp.float32)
        out = jax.block_until_ready(net_forward(x, params))
        ref = reference_forward(x, params)
        assert out.shape == (B, OUT)
        assert jnp.allclose(out, ref, atol=2e-2, rtol=2e-2), (
            float(jnp.max(jnp.abs(out - ref))))
    print("KERNEL_OK")
</pallas_src>

<mosaic_0001>
module attributes {stable_mosaic.version = 11 : i64} {
  func.func @mlp_kernel(%arg0: i32, %arg1: memref<8x784xf32, #tpu.memory_space<vmem>>, %arg2: memref<784x256xbf16, #tpu.memory_space<vmem>>, %arg3: memref<1x256xf32, #tpu.memory_space<vmem>>, %arg4: memref<256x128xbf16, #tpu.memory_space<vmem>>, %arg5: memref<1x128xf32, #tpu.memory_space<vmem>>, %arg6: memref<128x128xbf16, #tpu.memory_space<vmem>>, %arg7: memref<1x128xf32, #tpu.memory_space<vmem>>, %arg8: memref<8x128xbf16, #tpu.memory_space<vmem>>) attributes {dimension_semantics = [#tpu.dimension_semantics<parallel>], iteration_bounds = array<i64: 1>, scalar_prefetch = 0 : i64, scratch_operands = 0 : i64, tpu.core_type = #tpu.core_type<tc>, window_params = [{transform_indices = @transform_0, window_bounds = array<i64: 8, 784>}, {pipeline_mode = #tpu.pipeline_mode<synchronous>, transform_indices = @transform_1, window_bounds = array<i64: 784, 256>}, {pipeline_mode = #tpu.pipeline_mode<synchronous>, transform_indices = @transform_2, window_bounds = array<i64: 1, 256>}, {pipeline_mode = #tpu.pipeline_mode<synchronous>, transform_indices = @transform_3, window_bounds = array<i64: 256, 128>}, {pipeline_mode = #tpu.pipeline_mode<synchronous>, transform_indices = @transform_4, window_bounds = array<i64: 1, 128>}, {pipeline_mode = #tpu.pipeline_mode<synchronous>, transform_indices = @transform_5, window_bounds = array<i64: 128, 128>}, {pipeline_mode = #tpu.pipeline_mode<synchronous>, transform_indices = @transform_6, window_bounds = array<i64: 1, 128>}, {transform_indices = @transform_7, window_bounds = array<i64: 8, 128>}]} {
    %c0 = arith.constant 0 : index
    %c0_0 = arith.constant 0 : index
    %0 = vector.load %arg1[%c0, %c0_0] : memref<8x784xf32, #tpu.memory_space<vmem>>, vector<8x784xf32>
    %1 = arith.truncf %0 : vector<8x784xf32> to vector<8x784xbf16>
    %c0_1 = arith.constant 0 : index
    %c0_2 = arith.constant 0 : index
    %2 = vector.load %arg2[%c0_1, %c0_2] : memref<784x256xbf16, #tpu.memory_space<vmem>>, vector<784x256xbf16>
    %cst = arith.constant dense<0.000000e+00> : vector<8x256xf32>
    %3 = tpu.matmul %1, %2, %cst {dimension_numbers = #tpu.dot_dimension_numbers<[1], [0], [0], [1], [0, 0, 1, 1], [], []>} : vector<8x784xbf16>, vector<784x256xbf16>, vector<8x256xf32> -> vector<8x256xf32>
    %c0_3 = arith.constant 0 : index
    %c0_4 = arith.constant 0 : index
    %4 = vector.load %arg3[%c0_3, %c0_4] : memref<1x256xf32, #tpu.memory_space<vmem>>, vector<1x256xf32>
    %5 = vector.broadcast %4 : vector<1x256xf32> to vector<8x256xf32>
    %6 = arith.addf %3, %5 : vector<8x256xf32>
    %cst_5 = arith.constant 0.000000e+00 : f32
    %7 = vector.broadcast %cst_5 : f32 to vector<8x256xf32>
    %8 = arith.maximumf %6, %7 : vector<8x256xf32>
    %9 = arith.truncf %8 : vector<8x256xf32> to vector<8x256xbf16>
    %c0_6 = arith.constant 0 : index
    %c0_7 = arith.constant 0 : index
    %10 = vector.load %arg4[%c0_6, %c0_7] : memref<256x128xbf16, #tpu.memory_space<vmem>>, vector<256x128xbf16>
    %cst_8 = arith.constant dense<0.000000e+00> : vector<8x128xf32>
    %11 = tpu.matmul %9, %10, %cst_8 {dimension_numbers = #tpu.dot_dimension_numbers<[1], [0], [0], [1], [0, 0, 1, 1], [], []>} : vector<8x256xbf16>, vector<256x128xbf16>, vector<8x128xf32> -> vector<8x128xf32>
    %c0_9 = arith.constant 0 : index
    %c0_10 = arith.constant 0 : index
    %12 = vector.load %arg5[%c0_9, %c0_10] : memref<1x128xf32, #tpu.memory_space<vmem>>, vector<1x128xf32>
    %13 = vector.broadcast %12 : vector<1x128xf32> to vector<8x128xf32>
    %14 = arith.addf %11, %13 : vector<8x128xf32>
    %cst_11 = arith.constant 0.000000e+00 : f32
    %15 = vector.broadcast %cst_11 : f32 to vector<8x128xf32>
    %16 = arith.maximumf %14, %15 : vector<8x128xf32>
    %17 = arith.truncf %16 : vector<8x128xf32> to vector<8x128xbf16>
    %c0_12 = arith.constant 0 : index
    %c0_13 = arith.constant 0 : index
    %18 = vector.load %arg6[%c0_12, %c0_13] : memref<128x128xbf16, #tpu.memory_space<vmem>>, vector<128x128xbf16>
    %cst_14 = arith.constant dense<0.000000e+00> : vector<8x128xf32>
    %19 = tpu.matmul %17, %18, %cst_14 {dimension_numbers = #tpu.dot_dimension_numbers<[1], [0], [0], [1], [0, 0, 1, 1], [], []>} : vector<8x128xbf16>, vector<128x128xbf16>, vector<8x128xf32> -> vector<8x128xf32>
    %c0_15 = arith.constant 0 : index
    %c0_16 = arith.constant 0 : index
    %20 = vector.load %arg7[%c0_15, %c0_16] : memref<1x128xf32, #tpu.memory_space<vmem>>, vector<1x128xf32>
    %21 = vector.broadcast %20 : vector<1x128xf32> to vector<8x128xf32>
    %22 = arith.addf %19, %21 : vector<8x128xf32>
    %23 = arith.truncf %22 : vector<8x128xf32> to vector<8x128xbf16>
    %c0_17 = arith.constant 0 : index
    %c0_18 = arith.constant 0 : index
    %24 = vector.load %arg8[%c0_17, %c0_18] : memref<8x128xbf16, #tpu.memory_space<vmem>>, vector<8x128xbf16>
    tpu.vector_store %arg8[%c0_17, %c0_18], %23 {strides = array<i32>} : memref<8x128xbf16, #tpu.memory_space<vmem>>, vector<8x128xbf16>,
    return
  }
  func.func @transform_0(%arg0: i32) -> (i32, i32) {
    %c0_i32 = arith.constant 0 : i32
    %c0_i32_0 = arith.constant 0 : i32
    return %arg0, %c0_i32 : i32, i32
  }
  func.func @transform_1(%arg0: i32) -> (i32, i32) {
    %c0_i32 = arith.constant 0 : i32
    %c0_i32_0 = arith.constant 0 : i32
    %c0_i32_1 = arith.constant 0 : i32
    return %c0_i32, %c0_i32_0 : i32, i32
  }
  func.func @transform_2(%arg0: i32) -> (i32, i32) {
    %c0_i32 = arith.constant 0 : i32
    %c0_i32_0 = arith.constant 0 : i32
    %c0_i32_1 = arith.constant 0 : i32
    return %c0_i32, %c0_i32_0 : i32, i32
  }
  func.func @transform_3(%arg0: i32) -> (i32, i32) {
    %c0_i32 = arith.constant 0 : i32
    %c0_i32_0 = arith.constant 0 : i32
    %c0_i32_1 = arith.constant 0 : i32
    return %c0_i32, %c0_i32_0 : i32, i32
  }
  func.func @transform_4(%arg0: i32) -> (i32, i32) {
    %c0_i32 = arith.constant 0 : i32
    %c0_i32_0 = arith.constant 0 : i32
    %c0_i32_1 = arith.constant 0 : i32
    return %c0_i32, %c0_i32_0 : i32, i32
  }
  func.func @transform_5(%arg0: i32) -> (i32, i32) {
    %c0_i32 = arith.constant 0 : i32
    %c0_i32_0 = arith.constant 0 : i32
    %c0_i32_1 = arith.constant 0 : i32
    return %c0_i32, %c0_i32_0 : i32, i32
  }
  func.func @transform_6(%arg0: i32) -> (i32, i32) {
    %c0_i32 = arith.constant 0 : i32
    %c0_i32_0 = arith.constant 0 : i32
    %c0_i32_1 = arith.constant 0 : i32
    return %c0_i32, %c0_i32_0 : i32, i32
  }
  func.func @transform_7(%arg0: i32) -> (i32, i32) {
    %c0_i32 = arith.constant 0 : i32
    %c0_i32_0 = arith.constant 0 : i32
    return %arg0, %c0_i32 : i32, i32
  }
}

</mosaic_0001>

<bundles_post_ra>
// kernel: net_forward.1
= control target key start
LH: loop header
LB: loop body
LE: loop exit
PB: predicated region body
PF: predicated region fallthrough
CT: control target
= control target key end

     0   :  { %vm635_vm0 = vcmask 130048   ;;  %s2449_s1 = inlined_call_operand.vmem [shape: bf16[784,256], index: 1, kind: input, shape index: {}]   ;;  %s2450_s0 = inlined_call_operand.vmem [shape: f32[8,784], index: 0, kind: input, shape index: {}]   ;;  %s2451_s4 = inlined_call_operand.vmem [shape: f32[1,128], index: 4, kind: input, shape index: {}]   ;;  %s2452_s3 = inlined_call_operand.vmem [shape: bf16[256,128], index: 3, kind: input, shape index: {}]   ;;  %s2453_s2 = inlined_call_operand.vmem [shape: f32[1,256], index: 2, kind: input, shape index: {}]   ;;  %s2454_s6 = inlined_call_operand.vmem [shape: f32[1,128], index: 6, kind: input, shape index: {}]   ;;  %s2455_s5 = inlined_call_operand.vmem [shape: bf16[128,128], index: 5, kind: input, shape index: {}]   ;;  %s2456_s7 = inlined_call_operand.vmem [shape: bf16[8,128], index: 7, kind: output, shape index: {}]  }
   0x1   :  { %v1130_v0 = vld [vmem:[%s2449_s1 + $0x70] sm:$0xf]  ;;  %v1577_v1 = vld [vmem:[%s2449_s1 + $0x74] sm:$0xf0]  ;;  %v1122_v11 = vld [vmem:[%s2449_s1 + $0x60] sm:$0xf] }
   0x2   :  { %v1258_v2 = vld [vmem:[%s2449_s1 + $0x170] sm:$0xf]  ;;  %v1131_v3 = vor.u32 %v1577_v1, %v1130_v0  ;;  %v1609_v4 = vld [vmem:[%s2449_s1 + $0x174] sm:$0xf0]  ;;  %v1575_v13 = vld [vmem:[%s2449_s1 + $0x64] sm:$0xf0] }
   0x3   :  { %v1322_v5 = vld [vmem:[%s2449_s1 + $0x1f0] sm:$0xf]  ;;  %v1625_v6 = vld [vmem:[%s2449_s1 + $0x1f4] sm:$0xf0]  ;;  %v1259_v7 = vor.u32 %v1609_v4, %v1258_v2  ;;  %v1250_v14 = vld [vmem:[%s2449_s1 + $0x160] sm:$0xf]  ;;  %v1123_v16 = vor.u32 %v1575_v13, %v1122_v11 }
   0x4   :  { %v1323_v8 = vor.u32 %v1625_v6, %v1322_v5  ;;  %v1194_v9 = vld [vmem:[%s2449_s1 + $0xf0] sm:$0xf]  ;;  %v1593_v10 = vld [vmem:[%s2449_s1 + $0xf4] sm:$0xf0]  ;;  %639 = vmatpush.bf16.msra.mxu0 %v1131_v3  ;;  %v1607_v15 = vld [vmem:[%s2449_s1 + $0x164] sm:$0xf0] }
   0x5   :  { %v1195_v12 = vor.u32 %v1593_v10, %v1194_v9  ;;  %665 = vmatpush.bf16.msra.mxu2 %v1259_v7  ;;  %v1251_v17 = vor.u32 %v1607_v15, %v1250_v14  ;;  %v1314_v18 = vld [vmem:[%s2449_s1 + $0x1e0] sm:$0xf]  ;;  %v1623_v19 = vld [vmem:[%s2449_s1 + $0x1e4] sm:$0xf0]  ;;  %v1114_v23 = vld [vmem:[%s2449_s1 + $0x50] sm:$0xf] }
   0x6   :  { %678 = vmatpush.bf16.msra.mxu3 %v1323_v8  ;;  %v1186_v20 = vld [vmem:[%s2449_s1 + $0xe0] sm:$0xf]  ;;  %v1315_v21 = vor.u32 %v1623_v19, %v1314_v18  ;;  %v1591_v22 = vld [vmem:[%s2449_s1 + $0xe4] sm:$0xf0]  ;;  %v1573_v24 = vld [vmem:[%s2449_s1 + $0x54] sm:$0xf0] }
   0x7   :  { %652 = vmatpush.bf16.msra.mxu1 %v1195_v12  ;;  %v1187_v25 = vor.u32 %v1591_v22, %v1186_v20  ;;  %v1242_v26 = vld [vmem:[%s2449_s1 + $0x150] sm:$0xf]  ;;  %v1605_v27 = vld [vmem:[%s2449_s1 + $0x154] sm:$0xf0]  ;;  %v1115_v29 = vor.u32 %v1573_v24, %v1114_v23  ;;  %v1106_v35 = vld [vmem:[%s2449_s1 + $0x40] sm:$0xf] }
   0x8   :  { %v1306_v28 = vld [vmem:[%s2449_s1 + $0x1d0] sm:$0xf]  ;;  %640 = vmatpush.bf16.msra.mxu0 %v1123_v16  ;;  %v1621_v30 = vld [vmem:[%s2449_s1 + $0x1d4] sm:$0xf0]  ;;  %v1243_v33 = vor.u32 %v1605_v27, %v1242_v26  ;;  %v1571_v36 = vld [vmem:[%s2449_s1 + $0x44] sm:$0xf0] }
   0x9   :  { %v1178_v31 = vld [vmem:[%s2449_s1 + $0xd0] sm:$0xf]  ;;  %v1589_v32 = vld [vmem:[%s2449_s1 + $0xd4] sm:$0xf0]  ;;  %666 = vmatpush.bf16.msra.mxu2 %v1251_v17  ;;  %v1307_v34 = vor.u32 %v1621_v30, %v1306_v28  ;;  %v1234_v37 = vld [vmem:[%s2449_s1 + $0x140] sm:$0xf]  ;;  %v1107_v44 = vor.u32 %v1571_v36, %v1106_v35 }
   0xa   :  { %679 = vmatpush.bf16.msra.mxu3 %v1315_v21  ;;  %v1179_v38 = vor.u32 %v1589_v32, %v1178_v31  ;;  %v1603_v39 = vld [vmem:[%s2449_s1 + $0x144] sm:$0xf0]  ;;  %v1298_v40 = vld [vmem:[%s2449_s1 + $0x1c0] sm:$0xf]  ;;  %v1098_v47 = vld [vmem:[%s2449_s1 + $0x30] sm:$0xf] }
   0xb   :  { %653 = vmatpush.bf16.msra.mxu1 %v1187_v25  ;;  %v1619_v41 = vld [vmem:[%s2449_s1 + $0x1c4] sm:$0xf0]  ;;  %v1170_v42 = vld [vmem:[%s2449_s1 + $0xc0] sm:$0xf]  ;;  %v1235_v45 = vor.u32 %v1603_v39, %v1234_v37  ;;  %v1569_v48 = vld [vmem:[%s2449_s1 + $0x34] sm:$0xf0] }
   0xc   :  { %v1587_v43 = vld [vmem:[%s2449_s1 + $0xc4] sm:$0xf0]  ;;  %641 = vmatpush.bf16.msra.mxu0 %v1115_v29  ;;  %v1299_v46 = vor.u32 %v1619_v41, %v1298_v40  ;;  %v1226_v49 = vld [vmem:[%s2449_s1 + $0x130] sm:$0xf]  ;;  %v1601_v51 = vld [vmem:[%s2449_s1 + $0x134] sm:$0xf0]  ;;  %v1099_v56 = vor.u32 %v1569_v48, %v1098_v47 }
   0xd   :  { %667 = vmatpush.bf16.msra.mxu2 %v1243_v33  ;;  %v1171_v50 = vor.u32 %v1587_v43, %v1170_v42  ;;  %v1290_v52 = vld [vmem:[%s2449_s1 + $0x1b0] sm:$0xf]  ;;  %v1617_v53 = vld [vmem:[%s2449_s1 + $0x1b4] sm:$0xf0]  ;;  %v1227_v57 = vor.u32 %v1601_v51, %v1226_v49  ;;  %v1090_v59 = vld [vmem:[%s2449_s1 + $0x20] sm:$0xf] }
   0xe   :  { %680 = vmatpush.bf16.msra.mxu3 %v1307_v34  ;;  %v1162_v54 = vld [vmem:[%s2449_s1 + $0xb0] sm:$0xf]  ;;  %v1585_v55 = vld [vmem:[%s2449_s1 + $0xb4] sm:$0xf0]  ;;  %v1291_v58 = vor.u32 %v1617_v53, %v1290_v52  ;;  %v1567_v60 = vld [vmem:[%s2449_s1 + $0x24] sm:$0xf0] }
   0xf   :  { %654 = vmatpush.bf16.msra.mxu1 %v1179_v38  ;;  %v1218_v61 = vld [vmem:[%s2449_s1 + $0x120] sm:$0xf]  ;;  %v1163_v62 = vor.u32 %v1585_v55, %v1162_v54  ;;  %v1599_v63 = vld [vmem:[%s2449_s1 + $0x124] sm:$0xf0]  ;;  %v1091_v4 = vor.u32 %v1567_v60, %v1090_v59  ;;  %v1082_v7 = vld [vmem:[%s2449_s1 + $0x10] sm:$0xf] }
  0x10   :  { %642 = vmatpush.bf16.msra.mxu0 %v1107_v44  ;;  %v1282_v0 = vld [vmem:[%s2449_s1 + $0x1a0] sm:$0xf]  ;;  %v1615_v1 = vld [vmem:[%s2449_s1 + $0x1a4] sm:$0xf0]  ;;  %v1219_v5 = vor.u32 %v1599_v63, %v1218_v61  ;;  %v1565_v8 = vld [vmem:[%s2449_s1 + $0x14] sm:$0xf0] }
  0x11   :  { %668 = vmatpush.bf16.msra.mxu2 %v1235_v45  ;;  %v1154_v2 = vld [vmem:[%s2449_s1 + $0xa0] sm:$0xf]  ;;  %v1583_v3 = vld [vmem:[%s2449_s1 + $0xa4] sm:$0xf0]  ;;  %v1283_v6 = vor.u32 %v1615_v1, %v1282_v0  ;;  %v1210_v9 = vld [vmem:[%s2449_s1 + $0x110] sm:$0xf]  ;;  %v1083_v16 = vor.u32 %v1565_v8, %v1082_v7 }
  0x12   :  { %681 = vmatpush.bf16.msra.mxu3 %v1299_v46  ;;  %v1155_v10 = vor.u32 %v1583_v3, %v1154_v2  ;;  %v1597_v11 = vld [vmem:[%s2449_s1 + $0x114] sm:$0xf0]  ;;  %v1274_v12 = vld [vmem:[%s2449_s1 + $0x190] sm:$0xf]  ;;  %v1074_v17 = vld [vmem:[%s2449_s1] sm:$0xf] }
  0x13   :  { %655 = vmatpush.bf16.msra.mxu1 %v1171_v50  ;;  %v1613_v13 = vld [vmem:[%s2449_s1 + $0x194] sm:$0xf0]  ;;  %v1146_v14 = vld [vmem:[%s2449_s1 + $0x90] sm:$0xf]  ;;  %v1563_v18 = vld [vmem:[%s2449_s1 + $0x4] sm:$0xf0]  ;;  %v1211_v20 = vor.u32 %v1597_v11, %v1210_v9 }
  0x14   :  { %643 = vmatpush.bf16.msra.mxu0 %v1099_v56  ;;  %v1581_v15 = vld [vmem:[%s2449_s1 + $0x94] sm:$0xf0]  ;;  %v1202_v19 = vld [vmem:[%s2449_s1 + $0x100] sm:$0xf]  ;;  %v1275_v21 = vor.u32 %v1613_v13, %v1274_v12  ;;  %v1595_v22 = vld [vmem:[%s2449_s1 + $0x104] sm:$0xf0]  ;;  %v1075_v32 = vor.u32 %v1563_v18, %v1074_v17 }
  0x15   :  { %669 = vmatpush.bf16.msra.mxu2 %v1227_v57  ;;  %v1266_v23 = vld [vmem:[%s2449_s1 + $0x180] sm:$0xf]  ;;  %v1611_v24 = vld [vmem:[%s2449_s1 + $0x184] sm:$0xf0]  ;;  %v1147_v25 = vor.u32 %v1581_v15, %v1146_v14  ;;  %v1386_v26 = vld [vmem:[%s2449_s1 + $0x270] sm:$0xf]  ;;  %v1203_v36 = vor.u32 %v1595_v22, %v1202_v19 }
  0x16   :  { %682 = vmatpush.bf16.msra.mxu3 %v1291_v58  ;;  %v1641_v27 = vld [vmem:[%s2449_s1 + $0x274] sm:$0xf0]  ;;  %v1576_v28 = vld [vmem:[%s2449_s1 + $0x74] sm:$0xf]  ;;  %v1132_v29 = vld [vmem:[%s2449_s1 + $0x78] sm:$0xf0]  ;;  %v1267_v37 = vor.u32 %v1611_v24, %v1266_v23 }
  0x17   :  { %656 = vmatpush.bf16.msra.mxu1 %v1163_v62  ;;  %v1138_v30 = vld [vmem:[%s2449_s1 + $0x80] sm:$0xf]  ;;  %v1579_v31 = vld [vmem:[%s2449_s1 + $0x84] sm:$0xf0]  ;;  %v29_v33 = vld [vmem:[%s2450_s0 + $0x10] sm:$0xff]  ;;  %v1387_v41 = vor.u32 %v1641_v27, %v1386_v26  ;;  %v1135_v42 = vor.u32 %v1576_v28, %v1132_v29 }
  0x18   :  { %644 = vmatpush.bf16.msra.mxu0 %v1091_v4  ;;  %v1458_v34 = vld [vmem:[%s2449_s1 + $0x300] sm:$0xf]  ;;  %v1659_v35 = vld [vmem:[%s2449_s1 + $0x304] sm:$0xf0]  ;;  %v1450_v38 = vld [vmem:[%s2449_s1 + $0x2f0] sm:$0xf]  ;;  %v1139_v46 = vor.u32 %v1579_v31, %v1138_v30  ;;  %v1966_v51 = vpack.c.bf16 %v29_v33, %v29_v33 }
  0x19   :  { %670 = vmatpush.bf16.msra.mxu2 %v1219_v5  ;;  %v1657_v39 = vld [vmem:[%s2449_s1 + $0x2f4] sm:$0xf0]  ;;  %v1592_v40 = vld [vmem:[%s2449_s1 + $0xf4] sm:$0xf]  ;;  %v1196_v43 = vld [vmem:[%s2449_s1 + $0xf8] sm:$0xf0]  ;;  %v1459_v47 = vor.u32 %v1659_v35, %v1458_v34 }
  0x1a   :  { %683 = vmatpush.bf16.msra.mxu3 %v1283_v6  ;;  %v1378_v44 = vld [vmem:[%s2449_s1 + $0x260] sm:$0xf]  ;;  %v1639_v48 = vld [vmem:[%s2449_s1 + $0x264] sm:$0xf0]  ;;  %v1574_v49 = vld [vmem:[%s2449_s1 + $0x64] sm:$0xf]  ;;  %v1451_v52 = vor.u32 %v1657_v39, %v1450_v38  ;;  %v1199_v55 = vor.u32 %v1592_v40, %v1196_v43 }
  0x1b   :  { %657 = vmatpush.bf16.msra.mxu1 %v1155_v10  ;;  %v27_v45 = vld [vmem:[%s2450_s0] sm:$0xff]  ;;  %v1124_v50 = vld [vmem:[%s2449_s1 + $0x68] sm:$0xf0]  ;;  %v30_v53 = vld [vmem:[%s2450_s0 + $0x18] sm:$0xff]  ;;  %v1379_v59 = vor.u32 %v1639_v48, %v1378_v44 }
  0x1c   :  { %645 = vmatpush.bf16.msra.mxu0 %v1083_v16  ;;  %v28_v54 = vld [vmem:[%s2450_s0 + $0x8] sm:$0xff]  ;;  %v1974_v56 = vpack.c.bf16 %v27_v45, %v27_v45  ;;  %v1442_v57 = vld [vmem:[%s2449_s1 + $0x2e0] sm:$0xf]  ;;  %v1127_v60 = vor.u32 %v1574_v49, %v1124_v50  ;;  %v1590_v61 = vld [vmem:[%s2449_s1 + $0xe4] sm:$0xf]  ;;  %v1991_v0 = vpack.c.bf16 %v30_v53, %v30_v53 }
  0x1d   :  { %671 = vmatpush.bf16.msra.mxu2 %v1211_v20  ;;  %v1655_v58 = vld [vmem:[%s2449_s1 + $0x2e4] sm:$0xf0]  ;;  %v1188_v62 = vld [vmem:[%s2449_s1 + $0xe8] sm:$0xf0]  ;;  %v1370_v63 = vld [vmem:[%s2449_s1 + $0x250] sm:$0xf]  ;;  %v1993_v1 = vpack.c.bf16 %v28_v54, %v28_v54 }
  0x1e   :  { %684 = vmatpush.bf16.msra.mxu3 %v1275_v21  ;;  %v1637_v2 = vld [vmem:[%s2449_s1 + $0x254] sm:$0xf0]  ;;  %v1572_v3 = vld [vmem:[%s2449_s1 + $0x54] sm:$0xf]  ;;  %v1116_v4 = vld [vmem:[%s2449_s1 + $0x58] sm:$0xf0]  ;;  %v1443_v5 = vor.u32 %v1655_v58, %v1442_v57  ;;  %v1191_v6 = vor.u32 %v1590_v61, %v1188_v62 }
  0x1f   :  { %658 = vmatpush.bf16.msra.mxu1 %v1147_v25  ;;  %v1434_v7 = vld [vmem:[%s2449_s1 + $0x2d0] sm:$0xf]  ;;  %v1653_v8 = vld [vmem:[%s2449_s1 + $0x2d4] sm:$0xf0]  ;;  %v1371_v9 = vor.u32 %v1637_v2, %v1370_v63  ;;  %v1119_v10 = vor.u32 %v1572_v3, %v1116_v4  ;;  %v1588_v11 = vld [vmem:[%s2449_s1 + $0xd4] sm:$0xf] }
  0x20   :  { %646 = vmatpush.bf16.msra.mxu0 %v1075_v32  ;;  %v1180_v12 = vld [vmem:[%s2449_s1 + $0xd8] sm:$0xf0]  ;;  %v1362_v13 = vld [vmem:[%s2449_s1 + $0x240] sm:$0xf]  ;;  %v1635_v14 = vld [vmem:[%s2449_s1 + $0x244] sm:$0xf0]  ;;  %v1435_v17 = vor.u32 %v1653_v8, %v1434_v7 }
  0x21   :  { %672 = vmatpush.bf16.msra.mxu2 %v1203_v36  ;;  %v1570_v15 = vld [vmem:[%s2449_s1 + $0x44] sm:$0xf]  ;;  %v1108_v16 = vld [vmem:[%s2449_s1 + $0x48] sm:$0xf0]  ;;  %v1183_v18 = vor.u32 %v1588_v11, %v1180_v12  ;;  %v1426_v19 = vld [vmem:[%s2449_s1 + $0x2c0] sm:$0xf]  ;;  %v1363_v21 = vor.u32 %v1635_v14, %v1362_v13 }
  0x22   :  { %685 = vmatpush.bf16.msra.mxu3 %v1267_v37  ;;  %v1651_v20 = vld [vmem:[%s2449_s1 + $0x2c4] sm:$0xf0]  ;;  %v1111_v22 = vor.u32 %v1570_v15, %v1108_v16  ;;  %v1586_v23 = vld [vmem:[%s2449_s1 + $0xc4] sm:$0xf]  ;;  %v1172_v24 = vld [vmem:[%s2449_s1 + $0xc8] sm:$0xf0] }
  0x23   :  { %659 = vmatpush.bf16.msra.mxu1 %v1139_v46  ;;  %647 = vmatmul.bf16.vlgmr.msra.gmra.mxu0 %v1974_v56  ;;  %v1354_v25 = vld [vmem:[%s2449_s1 + $0x230] sm:$0xf]  ;;  %v1633_v26 = vld [vmem:[%s2449_s1 + $0x234] sm:$0xf0]  ;;  %v1568_v27 = vld [vmem:[%s2449_s1 + $0x34] sm:$0xf]  ;;  %v1427_v29 = vor.u32 %v1651_v20, %v1426_v19  ;;  %v1175_v30 = vor.u32 %v1586_v23, %v1172_v24 }
  0x24   :  { %691 = vmatpush.bf16.msrb.mxu0 %v1387_v41  ;;  %673 = vmatmul.bf16.vlgmr.msra.gmra.mxu2 %v1966_v51  ;;  %v1100_v28 = vld [vmem:[%s2449_s1 + $0x38] sm:$0xf0]  ;;  %v1418_v31 = vld [vmem:[%s2449_s1 + $0x2b0] sm:$0xf]  ;;  %v1649_v32 = vld [vmem:[%s2449_s1 + $0x2b4] sm:$0xf0]  ;;  %v1355_v34 = vor.u32 %v1633_v26, %v1354_v25 }
  0x25   :  { %724 = vmatpush.bf16.msrb.mxu2 %v1459_v47  ;;  %686 = vmatmul.bf16.vlgmr.msra.gmra.mxu3 %v1991_v0  ;;  %v33_v33 = vld [vmem:[%s2450_s0 + $0x30] sm:$0xff]  ;;  %v1103_v35 = vor.u32 %v1568_v27, %v1100_v28  ;;  %v1164_v37 = vld [vmem:[%s2449_s1 + $0xb8] sm:$0xf0]  ;;  %v1346_v38 = vld [vmem:[%s2449_s1 + $0x220] sm:$0xf] }
  0x26   :  { %730 = vmatpush.bf16.msrb.mxu3 %v1135_v42  ;;  %660 = vmatmul.bf16.vlgmr.msra.gmra.mxu1 %v1993_v1  ;;  %v1584_v36 = vld [vmem:[%s2449_s1 + $0xb4] sm:$0xf]  ;;  %v1631_v39 = vld [vmem:[%s2449_s1 + $0x224] sm:$0xf0]  ;;  %v1566_v40 = vld [vmem:[%s2449_s1 + $0x24] sm:$0xf]  ;;  %v1419_v42 = vor.u32 %v1649_v32, %v1418_v31  ;;  %v2083_v43 = vpack.c.bf16 %v33_v33, %v33_v33 }
  0x27   :  { %704 = vmatpush.bf16.msrb.mxu1 %v1451_v52  ;;  %v1092_v41 = vld [vmem:[%s2449_s1 + $0x28] sm:$0xf0]  ;;  %v1167_v44 = vor.u32 %v1584_v36, %v1164_v37  ;;  %v1410_v45 = vld [vmem:[%s2449_s1 + $0x2a0] sm:$0xf]  ;;  %v1647_v46 = vld [vmem:[%s2449_s1 + $0x2a4] sm:$0xf0]  ;;  %v1347_v47 = vor.u32 %v1631_v39, %v1346_v38 }
  0x28   :  { %692 = vmatpush.bf16.msrb.mxu0 %v1379_v59  ;;  %v1095_v48 = vor.u32 %v1566_v40, %v1092_v41  ;;  %v1582_v49 = vld [vmem:[%s2449_s1 + $0xa4] sm:$0xf]  ;;  %v1156_v50 = vld [vmem:[%s2449_s1 + $0xa8] sm:$0xf0]  ;;  %v1338_v52 = vld [vmem:[%s2449_s1 + $0x210] sm:$0xf]  ;;  %v1411_v57 = vor.u32 %v1647_v46, %v1410_v45 }
  0x29   :  { %743 = vmatpush.bf16.msra.mxu2 %v1199_v55  ;;  %v1629_v53 = vld [vmem:[%s2449_s1 + $0x214] sm:$0xf0]  ;;  %v1564_v54 = vld [vmem:[%s2449_s1 + $0x14] sm:$0xf]  ;;  %v1084_v55 = vld [vmem:[%s2449_s1 + $0x18] sm:$0xf0]  ;;  %v1159_v58 = vor.u32 %v1582_v49, %v1156_v50 }
  0x2a   :  { %731 = vmatpush.bf16.msrb.mxu3 %v1127_v60  ;;  %v1402_v59 = vld [vmem:[%s2449_s1 + $0x290] sm:$0xf]  ;;  %v1645_v60 = vld [vmem:[%s2449_s1 + $0x294] sm:$0xf0]  ;;  %v1580_v61 = vld [vmem:[%s2449_s1 + $0x94] sm:$0xf]  ;;  %v1339_v62 = vor.u32 %v1629_v53, %v1338_v52  ;;  %v1087_v63 = vor.u32 %v1564_v54, %v1084_v55 }
  0x2b   :  { %705 = vmatpush.bf16.msrb.mxu1 %v1443_v5  ;;  %v1148_v2 = vld [vmem:[%s2449_s1 + $0x98] sm:$0xf0]  ;;  %v1330_v3 = vld [vmem:[%s2449_s1 + $0x200] sm:$0xf]  ;;  %v1627_v4 = vld [vmem:[%s2449_s1 + $0x204] sm:$0xf0]  ;;  %v1403_v8 = vor.u32 %v1645_v60, %v1402_v59 }
  0x2c   :  { %693 = vmatpush.bf16.msrb.mxu0 %v1371_v9  ;;  %v1562_v5 = vld [vmem:[%s2449_s1 + $0x4] sm:$0xf]  ;;  %v1608_v7 = vld [vmem:[%s2449_s1 + $0x174] sm:$0xf]  ;;  %v1260_v9 = vld [vmem:[%s2449_s1 + $0x178] sm:$0xf0]  ;;  %v1151_v12 = vor.u32 %v1580_v61, %v1148_v2  ;;  %v1331_v16 = vor.u32 %v1627_v4, %v1330_v3 }
  0x2d   :  { %744 = vmatpush.bf16.msra.mxu2 %v1191_v6  ;;  %v1076_v6 = vld [vmem:[%s2449_s1 + $0x8] sm:$0xf0]  ;;  %v1388_v11 = vld [vmem:[%s2449_s1 + $0x278] sm:$0xf0]  ;;  %v1394_v13 = vld [vmem:[%s2449_s1 + $0x280] sm:$0xf] }
  0x2e   :  { %732 = vmatpush.bf16.msrb.mxu3 %v1119_v10  ;;  %v1640_v10 = vld [vmem:[%s2449_s1 + $0x274] sm:$0xf]  ;;  %v1643_v14 = vld [vmem:[%s2449_s1 + $0x284] sm:$0xf0]  ;;  %v31_v15 = vld [vmem:[%s2450_s0 + $0x20] sm:$0xff] }
  0x2f   :  { %706 = vmatpush.bf16.msrb.mxu1 %v1435_v17  ;;  %v1079_v17 = vor.u32 %v1562_v5, %v1076_v6  ;;  %v1140_v19 = vld [vmem:[%s2449_s1 + $0x88] sm:$0xf0]  ;;  %v1624_v20 = vld [vmem:[%s2449_s1 + $0x1f4] sm:$0xf]  ;;  %v1324_v23 = vld [vmem:[%s2449_s1 + $0x1f8] sm:$0xf0]  ;;  %v1395_v26 = vor.u32 %v1643_v14, %v1394_v13 }
  0x30   :  { %694 = vmatpush.bf16.msrb.mxu0 %v1363_v21  ;;  %v1263_v21 = vor.u32 %v1608_v7, %v1260_v9  ;;  %v1656_v24 = vld [vmem:[%s2449_s1 + $0x2f4] sm:$0xf]  ;;  %v1452_v25 = vld [vmem:[%s2449_s1 + $0x2f8] sm:$0xf0]  ;;  %v32_v27 = vld [vmem:[%s2450_s0 + $0x28] sm:$0xff] }
  0x31   :  { %745 = vmatpush.bf16.msra.mxu2 %v1183_v18  ;;  %v1578_v18 = vld [vmem:[%s2449_s1 + $0x84] sm:$0xf]  ;;  %v1380_v33 = vld [vmem:[%s2449_s1 + $0x268] sm:$0xf0]  ;;  %v2194_v37 = vpack.c.bf16 %v32_v27, %v32_v27  ;;  %v1244_v45 = vld [vmem:[%s2449_s1 + $0x158] sm:$0xf0] }
  0x32   :  { %733 = vmatpush.bf16.msrb.mxu3 %v1111_v22  ;;  %v1391_v22 = vor.u32 %v1640_v10, %v1388_v11  ;;  %v1606_v28 = vld [vmem:[%s2449_s1 + $0x164] sm:$0xf]  ;;  %v1143_v31 = vor.u32 %v1578_v18, %v1140_v19  ;;  %v1316_v39 = vld [vmem:[%s2449_s1 + $0x1e8] sm:$0xf0]  ;;  %v1636_v46 = vld [vmem:[%s2449_s1 + $0x254] sm:$0xf] }
  0x33   :  { %707 = vmatpush.bf16.msrb.mxu1 %v1427_v29  ;;  %v1252_v29 = vld [vmem:[%s2449_s1 + $0x168] sm:$0xf0]  ;;  %v1638_v32 = vld [vmem:[%s2449_s1 + $0x264] sm:$0xf]  ;;  %v1620_v50 = vld [vmem:[%s2449_s1 + $0x1d4] sm:$0xf] }
  0x34   :  { %695 = vmatpush.bf16.msrb.mxu0 %v1355_v34  ;;  %1464 = vmatmul.msk.bf16.vlgmr.msrb.gmra.mxu2 %vm635_vm0, %v2083_v43  ;;  %v1327_v34 = vor.u32 %v1624_v20, %v1324_v23  ;;  %v1622_v36 = vld [vmem:[%s2449_s1 + $0x1e4] sm:$0xf]  ;;  %v1255_v38 = vor.u32 %v1606_v28, %v1252_v29  ;;  %v1444_v41 = vld [vmem:[%s2449_s1 + $0x2e8] sm:$0xf0]  ;;  %v1308_v53 = vld [vmem:[%s2449_s1 + $0x1d8] sm:$0xf0] }
  0x35   :  { %746 = vmatpush.bf16.msra.mxu2 %v1175_v30  ;;  %v2183_v30 = vpack.c.bf16 %v31_v15, %v31_v15  ;;  %v1654_v40 = vld [vmem:[%s2449_s1 + $0x2e4] sm:$0xf]  ;;  %v1652_v54 = vld [vmem:[%s2449_s1 + $0x2d4] sm:$0xf]  ;;  %v1436_v55 = vld [vmem:[%s2449_s1 + $0x2d8] sm:$0xf0] }
  0x36   :  { %734 = vmatpush.bf16.msrb.mxu3 %v1103_v35  ;;  %v1455_v35 = vor.u32 %v1656_v24, %v1452_v25  ;;  %v1447_v49 = vor.u32 %v1654_v40, %v1444_v41  ;;  %v1236_v59 = vld [vmem:[%s2449_s1 + $0x148] sm:$0xf0]  ;;  %v1634_v60 = vld [vmem:[%s2449_s1 + $0x244] sm:$0xf]  ;;  %v1600_v6 = vld [vmem:[%s2449_s1 + $0x134] sm:$0xf] }
  0x37   :  { %708 = vmatpush.bf16.msrb.mxu1 %v1419_v42  ;;  %v1383_v42 = vor.u32 %v1638_v32, %v1380_v33  ;;  %v1364_v61 = vld [vmem:[%s2449_s1 + $0x248] sm:$0xf0]  ;;  %v1650_v4 = vld [vmem:[%s2449_s1 + $0x2c4] sm:$0xf]  ;;  %v1228_v7 = vld [vmem:[%s2449_s1 + $0x138] sm:$0xf0] }
  0x38   :  { %696 = vmatpush.bf16.msrb.mxu0 %v1347_v47  ;;  %v1372_v47 = vld [vmem:[%s2449_s1 + $0x258] sm:$0xf0]  ;;  %v1300_v3 = vld [vmem:[%s2449_s1 + $0x1c8] sm:$0xf0]  ;;  %v1367_v5 = vor.u32 %v1634_v60, %v1364_v61  ;;  %v1231_v13 = vor.u32 %v1600_v6, %v1228_v7  ;;  %v1648_v15 = vld [vmem:[%s2449_s1 + $0x2b4] sm:$0xf] }
  0x39   :  { %747 = vmatpush.bf16.msra.mxu2 %v1167_v44  ;;  %v1604_v44 = vld [vmem:[%s2449_s1 + $0x154] sm:$0xf]  ;;  %v1356_v9 = vld [vmem:[%s2449_s1 + $0x238] sm:$0xf0]  ;;  %v1598_v18 = vld [vmem:[%s2449_s1 + $0x124] sm:$0xf] }
  0x3a   :  { %735 = vmatpush.bf16.msrb.mxu3 %v1095_v48  ;;  %v1319_v48 = vor.u32 %v1622_v36, %v1316_v39  ;;  %v1247_v52 = vor.u32 %v1604_v44, %v1244_v45  ;;  %v1292_v14 = vld [vmem:[%s2449_s1 + $0x1b8] sm:$0xf0]  ;;  %v1220_v19 = vld [vmem:[%s2449_s1 + $0x128] sm:$0xf0]  ;;  %v1630_v20 = vld [vmem:[%s2449_s1 + $0x224] sm:$0xf] }
  0x3b   :  { %709 = vmatpush.bf16.msrb.mxu1 %v1411_v57  ;;  %v1375_v57 = vor.u32 %v1636_v46, %v1372_v47  ;;  %v1614_v24 = vld [vmem:[%s2449_s1 + $0x1a4] sm:$0xf]  ;;  %v1223_v25 = vor.u32 %v1598_v18, %v1220_v19  ;;  %v1412_v28 = vld [vmem:[%s2449_s1 + $0x2a8] sm:$0xf0]  ;;  %v1212_v32 = vld [vmem:[%s2449_s1 + $0x118] sm:$0xf0] }
  0x3c   :  { %697 = vmatpush.bf16.msrb.mxu0 %v1339_v62  ;;  %v1439_v62 = vor.u32 %v1652_v54, %v1436_v55  ;;  %v1646_v27 = vld [vmem:[%s2449_s1 + $0x2a4] sm:$0xf]  ;;  %v1628_v33 = vld [vmem:[%s2449_s1 + $0x214] sm:$0xf]  ;;  %v1276_v40 = vld [vmem:[%s2449_s1 + $0x198] sm:$0xf0] }
  0x3d   :  { %748 = vmatpush.bf16.msra.mxu2 %v1159_v58  ;;  %v1602_v58 = vld [vmem:[%s2449_s1 + $0x144] sm:$0xf]  ;;  %v1415_v36 = vor.u32 %v1646_v27, %v1412_v28  ;;  %v1644_v41 = vld [vmem:[%s2449_s1 + $0x294] sm:$0xf]  ;;  %v1204_v46 = vld [vmem:[%s2449_s1 + $0x108] sm:$0xf0] }
  0x3e   :  { %736 = vmatpush.bf16.msrb.mxu3 %v1087_v63  ;;  %v1618_v63 = vld [vmem:[%s2449_s1 + $0x1c4] sm:$0xf]  ;;  %v1239_v2 = vor.u32 %v1602_v58, %v1236_v59  ;;  %v1268_v54 = vld [vmem:[%s2449_s1 + $0x188] sm:$0xf0]  ;;  %v139_v6 = vld [vmem:[%s2453_s2] sm:$0x3] }
  0x3f   :  { %710 = vmatpush.bf16.msrb.mxu1 %v1403_v8  ;;  %v1632_v8 = vld [vmem:[%s2449_s1 + $0x234] sm:$0xf]  ;;  %v1303_v10 = vor.u32 %v1618_v63, %v1300_v3  ;;  %v1594_v45 = vld [vmem:[%s2449_s1 + $0x104] sm:$0xf]  ;;  %v1396_v58 = vld [vmem:[%s2449_s1 + $0x288] sm:$0xf0] }
  0x40   :  { %698 = vmatpush.bf16.msrb.mxu0 %v1331_v16  ;;  %v1420_v16 = vld [vmem:[%s2449_s1 + $0x2b8] sm:$0xf0]  ;;  %v1626_v47 = vld [vmem:[%s2449_s1 + $0x204] sm:$0xf]  ;;  %v1460_v60 = vld [vmem:[%s2449_s1 + $0x308] sm:$0xf0] }
  0x41   :  { %749 = vmatpush.bf16.msra.mxu2 %v1151_v12  ;;  %v1616_v12 = vld [vmem:[%s2449_s1 + $0x1b4] sm:$0xf]  ;;  %v1423_v23 = vor.u32 %v1648_v15, %v1420_v16  ;;  %v1658_v59 = vld [vmem:[%s2449_s1 + $0x304] sm:$0xf]  ;;  %v1667_v63 = vld [vmem:[%s2452_s3 + $0x38] sm:$0xff] }
  0x42   :  { %737 = vmatpush.bf16.msrb.mxu3 %v1079_v17  ;;  %v1359_v17 = vor.u32 %v1632_v8, %v1356_v9 }
  0x43   :  { %711 = vmatpush.bf16.msrb.mxu1 %v1395_v26  ;;  %699 = vmatmul.bf16.vlgmr.msrb.gmra.mxu0 %v2183_v30  ;;  %v1284_v26 = vld [vmem:[%s2449_s1 + $0x1a8] sm:$0xf0] }
  0x44   :  { %756 = vmatpush.bf16.msra.mxu0 %v1263_v21  ;;  %v1348_v21 = vld [vmem:[%s2449_s1 + $0x228] sm:$0xf0] }
  0x45   :  { %750 = vmatpush.bf16.msra.mxu2 %v1143_v31  ;;  %738 = vmatmul.bf16.vlgmr.msrb.gmra.mxu3 %v1974_v56  ;;  %v1428_v56 = vld [vmem:[%s2449_s1 + $0x2c8] sm:$0xf0]  ;;  %v1351_v29 = vor.u32 %v1630_v20, %v1348_v21  ;;  %v1596_v31 = vld [vmem:[%s2449_s1 + $0x114] sm:$0xf] }
  0x46   :  { %782 = vmatpush.bf16.msra.mxu3 %v1391_v22  ;;  %712 = vmatmul.bf16.vlgmr.msrb.gmra.mxu1 %v2194_v37  ;;  %v1431_v11 = vor.u32 %v1650_v4, %v1428_v56  ;;  %v1295_v22 = vor.u32 %v1616_v12, %v1292_v14  ;;  %v1215_v39 = vor.u32 %v1596_v31, %v1212_v32  ;;  %v1660_v56 = vld [vmem:[%s2452_s3] sm:$0xff] }
  0x47   :  { %769 = vmatpush.bf16.msra.mxu1 %v1327_v34  ;;  %v1340_v34 = vld [vmem:[%s2449_s1 + $0x218] sm:$0xf0] }
  0x48   :  { %757 = vmatpush.bf16.msra.mxu0 %v1255_v38  ;;  %751 = vmatmul.bf16.vlgmr.msra.gmra.mxu2 %v1993_v1  ;;  %v1311_v1 = vor.u32 %v1620_v50, %v1308_v53  ;;  %v1612_v38 = vld [vmem:[%s2449_s1 + $0x194] sm:$0xf]  ;;  %v1343_v44 = vor.u32 %v1628_v33, %v1340_v34  ;;  %v1610_v53 = vld [vmem:[%s2449_s1 + $0x184] sm:$0xf] }
  0x49   :  { %795 = vmatpush.bf16.msrb.mxu2 %v1455_v35  ;;  %v1287_v35 = vor.u32 %v1614_v24, %v1284_v26  ;;  %v1271_v61 = vor.u32 %v1610_v53, %v1268_v54  ;;  %v1673_v26 = vld [vmem:[%s2452_s3 + $0x68] sm:$0xff] }
  0x4a   :  { %783 = vmatpush.bf16.msra.mxu3 %v1383_v42  ;;  %v1404_v42 = vld [vmem:[%s2449_s1 + $0x298] sm:$0xf0] }
  0x4b   :  { %770 = vmatpush.bf16.msra.mxu1 %v1319_v48  ;;  %v1332_v48 = vld [vmem:[%s2449_s1 + $0x208] sm:$0xf0]  ;;  %v1407_v50 = vor.u32 %v1644_v41, %v1404_v42  ;;  %v1668_v41 = vld [vmem:[%s2452_s3 + $0x40] sm:$0xff] }
  0x4c   :  { %758 = vmatpush.bf16.msra.mxu0 %v1247_v52  ;;  %v1207_v52 = vor.u32 %v1594_v45, %v1204_v46  ;;  %v1335_v55 = vor.u32 %v1626_v47, %v1332_v48  ;;  %v142_v45 = vperm.slane %v139_v6, 1 }
  0x4d   :  { %796 = vmatpush.bf16.msrb.mxu2 %v1447_v49  ;;  %v1279_v49 = vor.u32 %v1612_v38, %v1276_v40  ;;  %v1669_v40 = vld [vmem:[%s2452_s3 + $0x48] sm:$0xff] }
  0x4e   :  { %784 = vmatpush.bf16.msra.mxu3 %v1375_v57  ;;  %v1642_v57 = vld [vmem:[%s2449_s1 + $0x284] sm:$0xf] }
  0x4f   :  { %771 = vmatpush.bf16.msra.mxu1 %v1311_v1  ;;  %v1399_v1 = vor.u32 %v1642_v57, %v1396_v58 }
  0x50   :  { %759 = vmatpush.bf16.msra.mxu0 %v1239_v2  ;;  %v1661_v2 = vld [vmem:[%s2452_s3 + $0x8] sm:$0xff] }
  0x51   :  { %797 = vmatpush.bf16.msrb.mxu2 %v1439_v62  ;;  %v1463_v62 = vor.u32 %v1658_v59, %v1460_v60 }
  0x52   :  { %785 = vmatpush.bf16.msra.mxu3 %v1367_v5 }
  0x53   :  { %772 = vmatpush.bf16.msra.mxu1 %v1303_v10  ;;  %v141_v10 = vperm.slane %v139_v6, 0  ;;  %v1684_v6 = vld [vmem:[%s2451_s4] ss:$0 sm:$0xff] }
  0x54   :  { %760 = vmatpush.bf16.msra.mxu0 %v1231_v13 }
  0x55   :  { %798 = vmatpush.bf16.msrb.mxu2 %v1431_v11 }
  0x56   :  { %786 = vmatpush.bf16.msra.mxu3 %v1359_v17  ;;  %v1675_v17 = vld [vmem:[%s2452_s3 + $0x78] sm:$0xff] }
  0x57   :  { %773 = vmatpush.bf16.msra.mxu1 %v1295_v22  ;;  %v1674_v22 = vld [vmem:[%s2452_s3 + $0x70] sm:$0xff] }
  0x58   :  { %761 = vmatpush.bf16.msra.mxu0 %v1223_v25 }
  0x59   :  { %799 = vmatpush.bf16.msrb.mxu2 %v1423_v23 }
  0x5a   :  { %787 = vmatpush.bf16.msra.mxu3 %v1351_v29  ;;  %v1672_v29 = vld [vmem:[%s2452_s3 + $0x60] sm:$0xff] }
  0x5b   :  { %774 = vmatpush.bf16.msra.mxu1 %v1287_v35  ;;  %v1671_v35 = vld [vmem:[%s2452_s3 + $0x58] sm:$0xff] }
  0x5c   :  { %762 = vmatpush.bf16.msra.mxu0 %v1215_v39 }
  0x5d   :  { %800 = vmatpush.bf16.msrb.mxu2 %v1415_v36  ;;  %v1670_v36 = vld [vmem:[%s2452_s3 + $0x50] sm:$0xff] }
  0x5e   :  { %788 = vmatpush.bf16.msra.mxu3 %v1343_v44 }
  0x5f   :  { %775 = vmatpush.bf16.msra.mxu1 %v1279_v49 }
  0x60   :  { %763 = vmatpush.bf16.msra.mxu0 %v1207_v52 }
  0x61   :  { %801 = vmatpush.bf16.msrb.mxu2 %v1407_v50 }
  0x62   :  { %789 = vmatpush.bf16.msra.mxu3 %v1335_v55 }
  0x63   :  { %776 = vmatpush.bf16.msra.mxu1 %v1271_v61  ;;  %764 = vmatmul.bf16.vlgmr.msra.gmra.mxu0 %v1966_v51  ;;  %v1666_v51 = vld [vmem:[%s2452_s3 + $0x30] sm:$0xff] }
  0x65   :  { %790 = vmatmul.bf16.vlgmr.msra.gmra.mxu3 %v2183_v30  ;;  %802 = vmatpush.bf16.msrb.mxu2 %v1399_v1  ;;  %v1665_v30 = vld [vmem:[%s2452_s3 + $0x28] sm:$0xff] }
  0x66   :  { %777 = vmatmul.bf16.vlgmr.msra.gmra.mxu1 %v1991_v0  ;;  %v1664_v0 = vld [vmem:[%s2452_s3 + $0x20] sm:$0xff]  ;;  %970 = vmatpush.bf16.msrb.mxu3 %v1675_v17 }
  0x67   :  { %957 = vmatpush.bf16.msrb.mxu1 %v1667_v63 }
  0x68   :  { %803 = vmatmul.bf16.vlgmr.msrb.gmra.mxu2 %v2194_v37  ;;  %v1662_v37 = vld [vmem:[%s2452_s3 + $0x10] sm:$0xff] }
  0x69   :  { %815 = vmatpush.bf16.msra.mxu2 %v1463_v62 }
  0x6a   :  { %971 = vmatpush.bf16.msrb.mxu3 %v1674_v22 }
  0x6b   :  { %958 = vmatpush.bf16.msrb.mxu1 %v1666_v51  ;;  %v1683_v51 = vld [vmem:[%s2455_s5 + $0x38] sm:$0xff] }
  0x6c   :  { %1053 = vmatpush.bf16.msrb.mxu0 %v1683_v51 }
  0x6e   :  { %972 = vmatpush.bf16.msrb.mxu3 %v1673_v26 }
  0x6f   :  { %959 = vmatpush.bf16.msrb.mxu1 %v1665_v30  ;;  %v1682_v30 = vld [vmem:[%s2455_s5 + $0x30] sm:$0xff] }
  0x70   :  { %1054 = vmatpush.bf16.msrb.mxu0 %v1682_v30 }
  0x72   :  { %973 = vmatpush.bf16.msrb.mxu3 %v1672_v29 }
  0x73   :  { %960 = vmatpush.bf16.msrb.mxu1 %v1664_v0  ;;  %v1681_v0 = vld [vmem:[%s2455_s5 + $0x28] sm:$0xff] }
  0x74   :  { %1055 = vmatpush.bf16.msrb.mxu0 %v1681_v0 }
  0x76   :  { %974 = vmatpush.bf16.msrb.mxu3 %v1671_v35 }
  0x78   :  { %1465 = vmatmul.msk.bf16.vlgmr.msra.gmra.mxu2 %vm635_vm0, %v2083_v43  ;;  %v1663_v43 = vld [vmem:[%s2452_s3 + $0x18] sm:$0xff] }
  0x79   :  { %961 = vmatpush.bf16.msrb.mxu1 %v1663_v43  ;;  %v1680_v43 = vld [vmem:[%s2455_s5 + $0x20] sm:$0xff] }
  0x7a   :  { %975 = vmatpush.bf16.msrb.mxu3 %v1670_v36  ;;  %1056 = vmatpush.bf16.msrb.mxu0 %v1680_v43 }
  0x7d   :  { %962 = vmatpush.bf16.msrb.mxu1 %v1662_v37  ;;  %v1679_v37 = vld [vmem:[%s2455_s5 + $0x18] sm:$0xff] }
  0x7e   :  { %976 = vmatpush.bf16.msrb.mxu3 %v1669_v40  ;;  %1057 = vmatpush.bf16.msrb.mxu0 %v1679_v37 }
  0x81   :  { %963 = vmatpush.bf16.msrb.mxu1 %v1661_v2  ;;  %v1678_v2 = vld [vmem:[%s2455_s5 + $0x10] sm:$0xff] }
  0x82   :  { %977 = vmatpush.bf16.msrb.mxu3 %v1668_v41  ;;  %1058 = vmatpush.bf16.msrb.mxu0 %v1678_v2 }
  0x85   :  { %964 = vmatpush.bf16.msrb.mxu1 %v1660_v56  ;;  %v1677_v56 = vld [vmem:[%s2455_s5 + $0x8] sm:$0xff] }
  0x86   :  { %1059 = vmatpush.bf16.msrb.mxu0 %v1677_v56 }
  0xa0   :  { %v648_v3 = vpop.f32.mrf.mxu0 }
  0xa1   :  { %v649_v12 = vadd.f32 %v648_v3, %v141_v10 }
  0xa3   :  { %v661_v4 = vpop.f32.mrf.mxu1 }
  0xa4   :  { %v662_v14 = vadd.f32 %v661_v4, %v649_v12 }
  0xa7   :  { %v674_v5 = vpop.f32.mrf.mxu2 }
  0xa8   :  { %v687_v7 = vpop.f32.mrf.mxu3  ;;  %v650_v8 = vpop.f32.mrf.mxu0  ;;  %v675_v16 = vadd.f32 %v674_v5, %v662_v14  ;;  %v1676_v5 = vld [vmem:[%s2455_s5] sm:$0xff] }
  0xa9   :  { %1060 = vmatpush.bf16.msrb.mxu0 %v1676_v5 }
  0xaa   :  { %v688_v18 = vadd.f32 %v687_v7, %v675_v16 }
  0xab   :  { %v663_v9 = vpop.f32.mrf.mxu1 }
  0xaf   :  { %v676_v11 = vpop.f32.mrf.mxu2 }
  0xb0   :  { %v689_v13 = vpop.f32.mrf.mxu3 }
  0xb1   :  { %v1685_v13 = vld [vmem:[%s2454_s6] ss:$0 sm:$0xff] }
  0xb7   :  { %v726_v15 = vpop.f32.mrf.mxu2 }
  0xbf   :  { %v728_v21 = vpop.f32.mrf.mxu2 }
  0xc0   :  { %v700_v19 = vpop.f32.mrf.mxu0 }
  0xc1   :  { %v701_v20 = vadd.f32 %v700_v19, %v688_v18 }
  0xc3   :  { %v713_v23 = vpop.f32.mrf.mxu1 }
  0xc4   :  { %v714_v24 = vadd.f32 %v713_v23, %v701_v20 }
  0xc6   :  { %v727_v25 = vadd.f32 %v726_v15, %v714_v24 }
  0xc8   :  { %v821_v27 = vmax.f32 %v727_v25, 0.0  ;;  %v702_v28 = vpop.f32.mrf.mxu0  ;;  %v739_v33 = vpop.f32.mrf.mxu3 }
  0xc9   :  { %v740_v48 = vadd.f32 %v739_v33, %v142_v45 }
  0xca   :  { %v823_v31 = vpack.c.bf16 %v821_v27, %v821_v27 }
  0xcb   :  { %v752_v32 = vpop.f32.mrf.mxu2  ;;  %v715_v34 = vpop.f32.mrf.mxu1 }
  0xcc   :  { %965 = vmatmul.bf16.vlgmr.msrb.gmra.mxu1 %v823_v31  ;;  %v753_v52 = vadd.f32 %v752_v32, %v740_v48 }
  0xd0   :  { %v741_v39 = vpop.f32.mrf.mxu3 }
  0xd3   :  { %v754_v38 = vpop.f32.mrf.mxu2 }
  0xe0   :  { %v765_v42 = vpop.f32.mrf.mxu0 }
  0xe1   :  { %v766_v53 = vadd.f32 %v765_v42, %v753_v52 }
  0xe3   :  { %v778_v44 = vpop.f32.mrf.mxu1 }
  0xe4   :  { %v779_v57 = vadd.f32 %v778_v44, %v766_v53 }
  0xe8   :  { %v791_v46 = vpop.f32.mrf.mxu3  ;;  %v767_v47 = vpop.f32.mrf.mxu0 }
  0xe9   :  { %v792_v58 = vadd.f32 %v791_v46, %v779_v57 }
  0xeb   :  { %v804_v49 = vpop.f32.mrf.mxu2  ;;  %v780_v50 = vpop.f32.mrf.mxu1 }
  0xec   :  { %v805_v59 = vadd.f32 %v804_v49, %v792_v58 }
  0xf0   :  { %v793_v54 = vpop.f32.mrf.mxu3 }
  0xf3   :  { %v806_v55 = vpop.f32.mrf.mxu2 }
  0xfb   :  { %v817_v60 = vpop.f32.mrf.mxu2 }
  0xfc   :  { %v818_v61 = vadd.f32 %v817_v60, %v805_v59 }
  0xfe   :  { %v822_v1 = vmax.f32 %v818_v61, 0.0 }
 0x100   :  { %v824_v62 = vpack.c.bf16 %v822_v1, %v822_v1 }
 0x102   :  { %978 = vmatmul.bf16.vlgmr.msrb.gmra.mxu3 %v824_v62 }
 0x103   :  { %v819_v63 = vpop.f32.mrf.mxu2 }
 0x149   :  { %v966_v3 = vpop.f32.mrf.mxu1 }
 0x14a   :  { %v967_v7 = vadd.f32 %v1684_v6, %v966_v3 }
 0x151   :  { %v968_v4 = vpop.f32.mrf.mxu1 }
 0x185   :  { %v979_v8 = vpop.f32.mrf.mxu3 }
 0x186   :  { %v980_v9 = vadd.f32 %v979_v8, %v967_v7 }
 0x188   :  { %v983_v10 = vmax.f32 %v980_v9, 0.0 }
 0x18a   :  { %v984_v11 = vpack.c.bf16 %v983_v10, %v983_v10 }
 0x18c   :  { %1061 = vmatmul.bf16.vlgmr.msrb.gmra.mxu0 %v984_v11 }
 0x18d   :  { %v981_v12 = vpop.f32.mrf.mxu3 }
 0x209   :  { %v1062_v14 = vpop.f32.mrf.mxu0 }
 0x20a   :  { %v1063_v15 = vadd.f32 %v1685_v13, %v1062_v14 }
 0x20c   :  { %v1066_v16 = vpack.c.bf16 %v1063_v15, %v1063_v15 }
 0x20e   :  { %1067 = vst [vmem:[%s2456_s7] sm:$0xf] %v1066_v16 }
 0x211   :  { %v1064_v17 = vpop.f32.mrf.mxu0 }

</bundles_post_ra>
